<compile_context>
chip_gen: v7x
topology: tpu7x:2x2x1
jax: 0.10.0
libtpu: 0.0.40
codegen_flags: <defaults>
</compile_context>

<pallas_src>
import functools

import jax
import jax.numpy as jnp
from jax import lax
from jax.experimental import pallas as pl
from jax.experimental.pallas import tpu as pltpu


def _separable_kernel(x_ref, dw_ref, db_ref, pw_ref, pb_ref, mask_ref, out_ref,
                      *, H, W, Nb, C, OC, use_mxu):
    # x_ref   : (Nb*C, L)    Nb images' channels stacked on sublanes, L = H*W on lanes
    # dw_ref  : (9, Nb*C, 1) depthwise 3x3 weights, tap k = (di+1)*3 + (dj+1), tiled per image
    # db_ref  : (Nb*C, 1)    depthwise bias (tiled per image)
    # pw_ref  : (C, OC, 1)   pointwise weights (VPU path)  OR  (OC, C) (MXU path)
    # pb_ref  : (OC, 1)      pointwise bias
    # mask_ref: (9, L)       precomputed f32 border masks (hoisted out of the kernel)
    # out_ref : (Nb*OC, L)   lane-dense output
    L = H * W
    xf = x_ref[...].astype(jnp.float32)          # (Nb*C, L)
    dwf = dw_ref[...]                            # (9, Nb*C, 1)
    mf = mask_ref[...]                           # (9, L)

    # ---- depthwise 3x3, padding=1: center tap seeds acc, 8 rolled + masked taps
    acc = xf * dwf[4]                            # center tap (always valid, no mask)
    k = 0
    for di in (-1, 0, 1):
        for dj in (-1, 0, 1):
            if di == 0 and dj == 0:
                k += 1
                continue
            off = di * W + dj
            # shifted[:, p] = xf[:, (p + off) mod L]; out-of-image taps zeroed by mask
            shifted = pltpu.roll(xf, shift=(-off) % L, axis=1)
            acc = acc + (shifted * mf[k:k + 1, :]) * dwf[k]
            k += 1
    acc = acc + db_ref[...]                      # (Nb*C, 1)

    # ---- pointwise 1x1 conv (per image)
    pb = pb_ref[...]                             # (OC, 1)
    if use_mxu:
        pw = pw_ref[...].astype(jnp.bfloat16)    # (OC, C) at the MXU boundary
    else:
        pwf = pw_ref[...]                        # (C, OC, 1)

    for b in range(Nb):
        acc_b = acc[b * C:(b + 1) * C, :]        # (C, L)
        if use_mxu:
            # bf16 operands, f32 accumulate on the MXU
            yb = jnp.dot(pw, acc_b.astype(jnp.bfloat16),
                         preferred_element_type=jnp.float32)
        else:
            # tiny C/OC: C outer-product FMAs on the VPU, skip the MXU round trip
            yb = pwf[0] * acc_b[0:1, :]          # (OC,1)*(1,L)
            for c in range(1, C):
                yb = yb + pwf[c] * acc_b[c:c + 1, :]
        out_ref[b * OC:(b + 1) * OC, :] = (yb + pb).astype(out_ref.dtype)


def _choose_nb(N, C, OC, L):
    """Images per grid step: fill sublanes / move ~256KB per step, keep grid >= 2."""
    bytes_per_img = (C + OC) * L * 4
    want_sublane = -(-8 // C)                          # fill the 8 sublanes per vreg
    want_bytes = -(-(256 * 1024) // bytes_per_img)     # a few hundred KB per step
    want = max(want_sublane, want_bytes)
    cap = max(1, N // 2) if N >= 2 else 1              # >=2 parallel steps for v7x's 2 TCs
    want = max(1, min(want, cap, N))
    return max(d for d in range(1, want + 1) if N % d == 0)


@jax.jit
def separable_block(x_nchw, dw_w, dw_b, pw_w, pw_b):
    """Forward pass of Separable_Block.

    x_nchw : (N, C, H, W)
    dw_w   : (C, 1, 3, 3)   depthwise conv weight (PyTorch layout)
    dw_b   : (C,)
    pw_w   : (OC, C, 1, 1)  pointwise conv weight (PyTorch layout)
    pw_b   : (OC,)
    returns (N, OC, H, W)
    """
    N, C, H, W = x_nchw.shape
    OC = pw_w.shape[0]
    L = H * W
    # MXU only when there is enough MAC work per pixel to amortize the push/drain
    use_mxu = (C * OC >= 256) and (C >= 8)

    Nb = _choose_nb(N, C, OC, L)
    G = N // Nb

    # free reshape: (N, C, H, W) -> (G, Nb*C, L); H*W becomes the lane axis
    x_packed = x_nchw.reshape(G, Nb * C, L)

    # weight repacking (tiny tensors)
    dw9 = jnp.transpose(dw_w[:, 0].reshape(C, 9), (1, 0)).reshape(9, C, 1)
    dw9 = jnp.tile(dw9, (1, Nb, 1))                    # (9, Nb*C, 1)
    db = jnp.tile(dw_b.reshape(C, 1), (Nb, 1))         # (Nb*C, 1)
    pw2 = pw_w[:, :, 0, 0]                             # (OC, C)
    if use_mxu:
        pw_arg = pw2                                   # (OC, C)
        pw_spec = pl.BlockSpec((OC, C), lambda n: (0, 0))
    else:
        pw_arg = jnp.transpose(pw2, (1, 0)).reshape(C, OC, 1)   # (C, OC, 1)
        pw_spec = pl.BlockSpec((C, OC, 1), lambda n: (0, 0, 0))
    pb = pw_b.reshape(OC, 1)

    # 9 static border masks, precomputed once (hoisted out of the kernel)
    pos = jnp.arange(L, dtype=jnp.int32)
    row, col = pos // W, pos % W
    masks = []
    for di in (-1, 0, 1):
        for dj in (-1, 0, 1):
            valid = ((row + di >= 0) & (row + di < H) &
                     (col + dj >= 0) & (col + dj < W))
            masks.append(valid.astype(jnp.float32))
    mask9 = jnp.stack(masks, axis=0)                   # (9, L)

    kernel = functools.partial(_separable_kernel, H=H, W=W, Nb=Nb, C=C, OC=OC,
                               use_mxu=use_mxu)

    out_packed = pl.pallas_call(
        kernel,
        out_shape=jax.ShapeDtypeStruct((G, Nb * OC, L), x_nchw.dtype),
        grid_spec=pltpu.PrefetchScalarGridSpec(
            num_scalar_prefetch=0,
            grid=(G,),
            in_specs=[
                pl.BlockSpec((None, Nb * C, L), lambda n: (n, 0, 0)),   # x
                pl.BlockSpec((9, Nb * C, 1), lambda n: (0, 0, 0)),      # dw
                pl.BlockSpec((Nb * C, 1), lambda n: (0, 0)),            # db
                pw_spec,                                                # pw
                pl.BlockSpec((OC, 1), lambda n: (0, 0)),                # pb
                pl.BlockSpec((9, L), lambda n: (0, 0)),                 # masks
            ],
            out_specs=pl.BlockSpec((None, Nb * OC, L), lambda n: (n, 0, 0)),
        ),
        compiler_params=pltpu.CompilerParams(
            dimension_semantics=("parallel",)),
    )(x_packed, dw9, db, pw_arg, pb, mask9)

    # free reshape back to NCHW
    return out_packed.reshape(N, OC, H, W)


def _reference(x, dw_w, dw_b, pw_w, pw_b):
    """Pure-JAX reference using lax conv (NCHW, matching PyTorch semantics)."""
    C = x.shape[1]
    dn = ("NCHW", "OIHW", "NCHW")
    out = lax.conv_general_dilated(
        x, dw_w, window_strides=(1, 1), padding=((1, 1), (1, 1)),
        feature_group_count=C, dimension_numbers=dn)
    out = out + dw_b[None, :, None, None]
    out = lax.conv_general_dilated(
        out, pw_w, window_strides=(1, 1), padding=((0, 0), (0, 0)),
        dimension_numbers=dn)
    out = out + pw_b[None, :, None, None]
    return out


def _make_params(key, C, OC, dtype=jnp.float32):
    k1, k2, k3, k4 = jax.random.split(key, 4)
    dw_w = jax.random.normal(k1, (C, 1, 3, 3), dtype=dtype) * 0.1
    dw_b = jax.random.normal(k2, (C,), dtype=dtype) * 0.1
    pw_w = jax.random.normal(k3, (OC, C, 1, 1), dtype=dtype) * 0.1
    pw_b = jax.random.normal(k4, (OC,), dtype=dtype) * 0.1
    return dw_w, dw_b, pw_w, pw_b


if __name__ == "__main__":
    key = jax.random.PRNGKey(0)
    kx1, kp1, kx2, kp2 = jax.random.split(key, 4)

    # ---- test 1: tiny channels -> VPU pointwise path (matches module example sizes)
    N, C, H, W, OC = 2, 4, 16, 16, 8
    x = jax.random.normal(kx1, (N, C, H, W), dtype=jnp.float32)
    dw_w, dw_b, pw_w, pw_b = _make_params(kp1, C, OC)

    out = separable_block(x, dw_w, dw_b, pw_w, pw_b)
    out = jax.block_until_ready(out)
    ref = _reference(x, dw_w, dw_b, pw_w, pw_b)
    assert out.shape == (N, OC, H, W), out.shape
    assert jnp.allclose(out, ref, atol=1e-4, rtol=1e-4), \
        float(jnp.max(jnp.abs(out - ref)))

    # ---- test 2: larger channels -> MXU pointwise path (bf16 operands, f32 acc)
    C2, OC2 = 32, 16
    x2 = jax.random.normal(kx2, (N, C2, H, W), dtype=jnp.float32)
    dw_w2, dw_b2, pw_w2, pw_b2 = _make_params(kp2, C2, OC2)

    out2 = separable_block(x2, dw_w2, dw_b2, pw_w2, pw_b2)
    out2 = jax.block_until_ready(out2)
    ref2 = _reference(x2, dw_w2, dw_b2, pw_w2, pw_b2)
    assert out2.shape == (N, OC2, H, W), out2.shape
    # bf16 MXU operands -> ~1e-3 relative error vs the f32 reference
    assert jnp.allclose(out2, ref2, atol=3e-2, rtol=3e-2), \
        float(jnp.max(jnp.abs(out2 - ref2)))

    print("KERNEL_OK")
</pallas_src>

<mosaic_0001>
module attributes {stable_mosaic.version = 11 : i64} {
  func.func @_separable_kernel(%arg0: i32, %arg1: memref<1x4x256xf32, #tpu.memory_space<vmem>>, %arg2: memref<9x4x1xf32, #tpu.memory_space<vmem>>, %arg3: memref<4x1xf32, #tpu.memory_space<vmem>>, %arg4: memref<4x8x1xf32, #tpu.memory_space<vmem>>, %arg5: memref<8x1xf32, #tpu.memory_space<vmem>>, %arg6: memref<9x256xf32, #tpu.memory_space<vmem>>, %arg7: memref<1x8x256xf32, #tpu.memory_space<vmem>>) attributes {dimension_semantics = [#tpu.dimension_semantics<parallel>], iteration_bounds = array<i64: 2>, scalar_prefetch = 0 : i64, scratch_operands = 0 : i64, tpu.core_type = #tpu.core_type<tc>, window_params = [{transform_indices = @transform_0, window_bounds = array<i64: 1, 4, 256>}, {pipeline_mode = #tpu.pipeline_mode<synchronous>, transform_indices = @transform_1, window_bounds = array<i64: 9, 4, 1>}, {pipeline_mode = #tpu.pipeline_mode<synchronous>, transform_indices = @transform_2, window_bounds = array<i64: 4, 1>}, {pipeline_mode = #tpu.pipeline_mode<synchronous>, transform_indices = @transform_3, window_bounds = array<i64: 4, 8, 1>}, {pipeline_mode = #tpu.pipeline_mode<synchronous>, transform_indices = @transform_4, window_bounds = array<i64: 8, 1>}, {pipeline_mode = #tpu.pipeline_mode<synchronous>, transform_indices = @transform_5, window_bounds = array<i64: 9, 256>}, {transform_indices = @transform_6, window_bounds = array<i64: 1, 8, 256>}]} {
    %c0 = arith.constant 0 : index
    %c0_0 = arith.constant 0 : index
    %c0_1 = arith.constant 0 : index
    %0 = vector.load %arg1[%c0, %c0_0, %c0_1] : memref<1x4x256xf32, #tpu.memory_space<vmem>>, vector<1x4x256xf32>
    %1 = vector.shape_cast %0 : vector<1x4x256xf32> to vector<4x256xf32>
    %c0_2 = arith.constant 0 : index
    %c0_3 = arith.constant 0 : index
    %c0_4 = arith.constant 0 : index
    %2 = vector.load %arg2[%c0_2, %c0_3, %c0_4] : memref<9x4x1xf32, #tpu.memory_space<vmem>>, vector<9x4x1xf32>
    %c0_5 = arith.constant 0 : index
    %c0_6 = arith.constant 0 : index
    %3 = vector.load %arg6[%c0_5, %c0_6] : memref<9x256xf32, #tpu.memory_space<vmem>>, vector<9x256xf32>
    %4 = vector.extract_strided_slice %2 {offsets = [4, 0, 0], sizes = [1, 4, 1], strides = [1, 1, 1]} : vector<9x4x1xf32> to vector<1x4x1xf32>
    %5 = vector.shape_cast %4 : vector<1x4x1xf32> to vector<4x1xf32>
    %6 = vector.broadcast %5 : vector<4x1xf32> to vector<4x256xf32>
    %7 = arith.mulf %1, %6 : vector<4x256xf32>
    %c17_i32 = arith.constant 17 : i32
    %8 = tpu.dynamic_rotate %1 by %c17_i32 dim 1 : vector<4x256xf32>, i32 -> vector<4x256xf32>
    %9 = vector.extract_strided_slice %3 {offsets = [0, 0], sizes = [1, 256], strides = [1, 1]} : vector<9x256xf32> to vector<1x256xf32>
    %10 = vector.broadcast %9 : vector<1x256xf32> to vector<4x256xf32>
    %11 = arith.mulf %8, %10 : vector<4x256xf32>
    %12 = vector.extract_strided_slice %2 {offsets = [0, 0, 0], sizes = [1, 4, 1], strides = [1, 1, 1]} : vector<9x4x1xf32> to vector<1x4x1xf32>
    %13 = vector.shape_cast %12 : vector<1x4x1xf32> to vector<4x1xf32>
    %14 = vector.broadcast %13 : vector<4x1xf32> to vector<4x256xf32>
    %15 = arith.mulf %11, %14 : vector<4x256xf32>
    %16 = arith.addf %7, %15 : vector<4x256xf32>
    %c16_i32 = arith.constant 16 : i32
    %17 = tpu.dynamic_rotate %1 by %c16_i32 dim 1 : vector<4x256xf32>, i32 -> vector<4x256xf32>
    %18 = vector.extract_strided_slice %3 {offsets = [1, 0], sizes = [1, 256], strides = [1, 1]} : vector<9x256xf32> to vector<1x256xf32>
    %19 = vector.broadcast %18 : vector<1x256xf32> to vector<4x256xf32>
    %20 = arith.mulf %17, %19 : vector<4x256xf32>
    %21 = vector.extract_strided_slice %2 {offsets = [1, 0, 0], sizes = [1, 4, 1], strides = [1, 1, 1]} : vector<9x4x1xf32> to vector<1x4x1xf32>
    %22 = vector.shape_cast %21 : vector<1x4x1xf32> to vector<4x1xf32>
    %23 = vector.broadcast %22 : vector<4x1xf32> to vector<4x256xf32>
    %24 = arith.mulf %20, %23 : vector<4x256xf32>
    %25 = arith.addf %16, %24 : vector<4x256xf32>
    %c15_i32 = arith.constant 15 : i32
    %26 = tpu.dynamic_rotate %1 by %c15_i32 dim 1 : vector<4x256xf32>, i32 -> vector<4x256xf32>
    %27 = vector.extract_strided_slice %3 {offsets = [2, 0], sizes = [1, 256], strides = [1, 1]} : vector<9x256xf32> to vector<1x256xf32>
    %28 = vector.broadcast %27 : vector<1x256xf32> to vector<4x256xf32>
    %29 = arith.mulf %26, %28 : vector<4x256xf32>
    %30 = vector.extract_strided_slice %2 {offsets = [2, 0, 0], sizes = [1, 4, 1], strides = [1, 1, 1]} : vector<9x4x1xf32> to vector<1x4x1xf32>
    %31 = vector.shape_cast %30 : vector<1x4x1xf32> to vector<4x1xf32>
    %32 = vector.broadcast %31 : vector<4x1xf32> to vector<4x256xf32>
    %33 = arith.mulf %29, %32 : vector<4x256xf32>
    %34 = arith.addf %25, %33 : vector<4x256xf32>
    %c1_i32 = arith.constant 1 : i32
    %35 = tpu.dynamic_rotate %1 by %c1_i32 dim 1 : vector<4x256xf32>, i32 -> vector<4x256xf32>
    %36 = vector.extract_strided_slice %3 {offsets = [3, 0], sizes = [1, 256], strides = [1, 1]} : vector<9x256xf32> to vector<1x256xf32>
    %37 = vector.broadcast %36 : vector<1x256xf32> to vector<4x256xf32>
    %38 = arith.mulf %35, %37 : vector<4x256xf32>
    %39 = vector.extract_strided_slice %2 {offsets = [3, 0, 0], sizes = [1, 4, 1], strides = [1, 1, 1]} : vector<9x4x1xf32> to vector<1x4x1xf32>
    %40 = vector.shape_cast %39 : vector<1x4x1xf32> to vector<4x1xf32>
    %41 = vector.broadcast %40 : vector<4x1xf32> to vector<4x256xf32>
    %42 = arith.mulf %38, %41 : vector<4x256xf32>
    %43 = arith.addf %34, %42 : vector<4x256xf32>
    %c255_i32 = arith.constant 255 : i32
    %44 = tpu.dynamic_rotate %1 by %c255_i32 dim 1 : vector<4x256xf32>, i32 -> vector<4x256xf32>
    %45 = vector.extract_strided_slice %3 {offsets = [5, 0], sizes = [1, 256], strides = [1, 1]} : vector<9x256xf32> to vector<1x256xf32>
    %46 = vector.broadcast %45 : vector<1x256xf32> to vector<4x256xf32>
    %47 = arith.mulf %44, %46 : vector<4x256xf32>
    %48 = vector.extract_strided_slice %2 {offsets = [5, 0, 0], sizes = [1, 4, 1], strides = [1, 1, 1]} : vector<9x4x1xf32> to vector<1x4x1xf32>
    %49 = vector.shape_cast %48 : vector<1x4x1xf32> to vector<4x1xf32>
    %50 = vector.broadcast %49 : vector<4x1xf32> to vector<4x256xf32>
    %51 = arith.mulf %47, %50 : vector<4x256xf32>
    %52 = arith.addf %43, %51 : vector<4x256xf32>
    %c241_i32 = arith.constant 241 : i32
    %53 = tpu.dynamic_rotate %1 by %c241_i32 dim 1 : vector<4x256xf32>, i32 -> vector<4x256xf32>
    %54 = vector.extract_strided_slice %3 {offsets = [6, 0], sizes = [1, 256], strides = [1, 1]} : vector<9x256xf32> to vector<1x256xf32>
    %55 = vector.broadcast %54 : vector<1x256xf32> to vector<4x256xf32>
    %56 = arith.mulf %53, %55 : vector<4x256xf32>
    %57 = vector.extract_strided_slice %2 {offsets = [6, 0, 0], sizes = [1, 4, 1], strides = [1, 1, 1]} : vector<9x4x1xf32> to vector<1x4x1xf32>
    %58 = vector.shape_cast %57 : vector<1x4x1xf32> to vector<4x1xf32>
    %59 = vector.broadcast %58 : vector<4x1xf32> to vector<4x256xf32>
    %60 = arith.mulf %56, %59 : vector<4x256xf32>
    %61 = arith.addf %52, %60 : vector<4x256xf32>
    %c240_i32 = arith.constant 240 : i32
    %62 = tpu.dynamic_rotate %1 by %c240_i32 dim 1 : vector<4x256xf32>, i32 -> vector<4x256xf32>
    %63 = vector.extract_strided_slice %3 {offsets = [7, 0], sizes = [1, 256], strides = [1, 1]} : vector<9x256xf32> to vector<1x256xf32>
    %64 = vector.broadcast %63 : vector<1x256xf32> to vector<4x256xf32>
    %65 = arith.mulf %62, %64 : vector<4x256xf32>
    %66 = vector.extract_strided_slice %2 {offsets = [7, 0, 0], sizes = [1, 4, 1], strides = [1, 1, 1]} : vector<9x4x1xf32> to vector<1x4x1xf32>
    %67 = vector.shape_cast %66 : vector<1x4x1xf32> to vector<4x1xf32>
    %68 = vector.broadcast %67 : vector<4x1xf32> to vector<4x256xf32>
    %69 = arith.mulf %65, %68 : vector<4x256xf32>
    %70 = arith.addf %61, %69 : vector<4x256xf32>
    %c239_i32 = arith.constant 239 : i32
    %71 = tpu.dynamic_rotate %1 by %c239_i32 dim 1 : vector<4x256xf32>, i32 -> vector<4x256xf32>
    %72 = vector.extract_strided_slice %3 {offsets = [8, 0], sizes = [1, 256], strides = [1, 1]} : vector<9x256xf32> to vector<1x256xf32>
    %73 = vector.broadcast %72 : vector<1x256xf32> to vector<4x256xf32>
    %74 = arith.mulf %71, %73 : vector<4x256xf32>
    %75 = vector.extract_strided_slice %2 {offsets = [8, 0, 0], sizes = [1, 4, 1], strides = [1, 1, 1]} : vector<9x4x1xf32> to vector<1x4x1xf32>
    %76 = vector.shape_cast %75 : vector<1x4x1xf32> to vector<4x1xf32>
    %77 = vector.broadcast %76 : vector<4x1xf32> to vector<4x256xf32>
    %78 = arith.mulf %74, %77 : vector<4x256xf32>
    %79 = arith.addf %70, %78 : vector<4x256xf32>
    %c0_7 = arith.constant 0 : index
    %c0_8 = arith.constant 0 : index
    %80 = vector.load %arg3[%c0_7, %c0_8] : memref<4x1xf32, #tpu.memory_space<vmem>>, vector<4x1xf32>
    %81 = vector.broadcast %80 : vector<4x1xf32> to vector<4x256xf32>
    %82 = arith.addf %79, %81 : vector<4x256xf32>
    %c0_9 = arith.constant 0 : index
    %c0_10 = arith.constant 0 : index
    %83 = vector.load %arg5[%c0_9, %c0_10] : memref<8x1xf32, #tpu.memory_space<vmem>>, vector<8x1xf32>
    %c0_11 = arith.constant 0 : index
    %c0_12 = arith.constant 0 : index
    %c0_13 = arith.constant 0 : index
    %84 = vector.load %arg4[%c0_11, %c0_12, %c0_13] : memref<4x8x1xf32, #tpu.memory_space<vmem>>, vector<4x8x1xf32>
    %85 = vector.extract_strided_slice %84 {offsets = [0, 0, 0], sizes = [1, 8, 1], strides = [1, 1, 1]} : vector<4x8x1xf32> to vector<1x8x1xf32>
    %86 = vector.shape_cast %85 : vector<1x8x1xf32> to vector<8x1xf32>
    %87 = vector.extract_strided_slice %82 {offsets = [0, 0], sizes = [1, 256], strides = [1, 1]} : vector<4x256xf32> to vector<1x256xf32>
    %88 = vector.broadcast %86 : vector<8x1xf32> to vector<8x256xf32>
    %89 = vector.broadcast %87 : vector<1x256xf32> to vector<8x256xf32>
    %90 = arith.mulf %88, %89 : vector<8x256xf32>
    %91 = vector.extract_strided_slice %84 {offsets = [1, 0, 0], sizes = [1, 8, 1], strides = [1, 1, 1]} : vector<4x8x1xf32> to vector<1x8x1xf32>
    %92 = vector.shape_cast %91 : vector<1x8x1xf32> to vector<8x1xf32>
    %93 = vector.extract_strided_slice %82 {offsets = [1, 0], sizes = [1, 256], strides = [1, 1]} : vector<4x256xf32> to vector<1x256xf32>
    %94 = vector.broadcast %92 : vector<8x1xf32> to vector<8x256xf32>
    %95 = vector.broadcast %93 : vector<1x256xf32> to vector<8x256xf32>
    %96 = arith.mulf %94, %95 : vector<8x256xf32>
    %97 = arith.addf %90, %96 : vector<8x256xf32>
    %98 = vector.extract_strided_slice %84 {offsets = [2, 0, 0], sizes = [1, 8, 1], strides = [1, 1, 1]} : vector<4x8x1xf32> to vector<1x8x1xf32>
    %99 = vector.shape_cast %98 : vector<1x8x1xf32> to vector<8x1xf32>
    %100 = vector.extract_strided_slice %82 {offsets = [2, 0], sizes = [1, 256], strides = [1, 1]} : vector<4x256xf32> to vector<1x256xf32>
    %101 = vector.broadcast %99 : vector<8x1xf32> to vector<8x256xf32>
    %102 = vector.broadcast %100 : vector<1x256xf32> to vector<8x256xf32>
    %103 = arith.mulf %101, %102 : vector<8x256xf32>
    %104 = arith.addf %97, %103 : vector<8x256xf32>
    %105 = vector.extract_strided_slice %84 {offsets = [3, 0, 0], sizes = [1, 8, 1], strides = [1, 1, 1]} : vector<4x8x1xf32> to vector<1x8x1xf32>
    %106 = vector.shape_cast %105 : vector<1x8x1xf32> to vector<8x1xf32>
    %107 = vector.extract_strided_slice %82 {offsets = [3, 0], sizes = [1, 256], strides = [1, 1]} : vector<4x256xf32> to vector<1x256xf32>
    %108 = vector.broadcast %106 : vector<8x1xf32> to vector<8x256xf32>
    %109 = vector.broadcast %107 : vector<1x256xf32> to vector<8x256xf32>
    %110 = arith.mulf %108, %109 : vector<8x256xf32>
    %111 = arith.addf %104, %110 : vector<8x256xf32>
    %112 = vector.broadcast %83 : vector<8x1xf32> to vector<8x256xf32>
    %113 = arith.addf %111, %112 : vector<8x256xf32>
    %c0_14 = arith.constant 0 : index
    %c0_15 = arith.constant 0 : index
    %c0_16 = arith.constant 0 : index
    %114 = vector.load %arg7[%c0_14, %c0_15, %c0_16] : memref<1x8x256xf32, #tpu.memory_space<vmem>>, vector<1x8x256xf32>
    %115 = vector.shape_cast %114 : vector<1x8x256xf32> to vector<8x256xf32>
    %116 = vector.shape_cast %113 : vector<8x256xf32> to vector<1x8x256xf32>
    tpu.vector_store %arg7[%c0_14, %c0_15, %c0_16], %116 {strides = array<i32>} : memref<1x8x256xf32, #tpu.memory_space<vmem>>, vector<1x8x256xf32>,
    return
  }
  func.func @transform_0(%arg0: i32) -> (i32, i32, i32) {
    %c0_i32 = arith.constant 0 : i32
    %c0_i32_0 = arith.constant 0 : i32
    %c0_i32_1 = arith.constant 0 : i32
    return %arg0, %c0_i32, %c0_i32_0 : i32, i32, i32
  }
  func.func @transform_1(%arg0: i32) -> (i32, i32, i32) {
    %c0_i32 = arith.constant 0 : i32
    %c0_i32_0 = arith.constant 0 : i32
    %c0_i32_1 = arith.constant 0 : i32
    %c0_i32_2 = arith.constant 0 : i32
    return %c0_i32, %c0_i32_0, %c0_i32_1 : i32, i32, i32
  }
  func.func @transform_2(%arg0: i32) -> (i32, i32) {
    %c0_i32 = arith.constant 0 : i32
    %c0_i32_0 = arith.constant 0 : i32
    %c0_i32_1 = arith.constant 0 : i32
    return %c0_i32, %c0_i32_0 : i32, i32
  }
  func.func @transform_3(%arg0: i32) -> (i32, i32, i32) {
    %c0_i32 = arith.constant 0 : i32
    %c0_i32_0 = arith.constant 0 : i32
    %c0_i32_1 = arith.constant 0 : i32
    %c0_i32_2 = arith.constant 0 : i32
    return %c0_i32, %c0_i32_0, %c0_i32_1 : i32, i32, i32
  }
  func.func @transform_4(%arg0: i32) -> (i32, i32) {
    %c0_i32 = arith.constant 0 : i32
    %c0_i32_0 = arith.constant 0 : i32
    %c0_i32_1 = arith.constant 0 : i32
    return %c0_i32, %c0_i32_0 : i32, i32
  }
  func.func @transform_5(%arg0: i32) -> (i32, i32) {
    %c0_i32 = arith.constant 0 : i32
    %c0_i32_0 = arith.constant 0 : i32
    %c0_i32_1 = arith.constant 0 : i32
    return %c0_i32, %c0_i32_0 : i32, i32
  }
  func.func @transform_6(%arg0: i32) -> (i32, i32, i32) {
    %c0_i32 = arith.constant 0 : i32
    %c0_i32_0 = arith.constant 0 : i32
    %c0_i32_1 = arith.constant 0 : i32
    return %arg0, %c0_i32, %c0_i32_0 : i32, i32, i32
  }
}

</mosaic_0001>

<bundles_post_ra>
// kernel: separable_block.1
= control target key start
LH: loop header
LB: loop body
LE: loop exit
PB: predicated region body
PF: predicated region fallthrough
CT: control target
= control target key end

     0   :  { %s795_s21 = smov 0   ;;  %s999_s0 = inlined_call_operand.vmem [shape: f32[2,4,256], index: 0, kind: input, shape index: {}]   ;;  %s1000_s1 = inlined_call_operand.vmem [shape: f32[9,4,1], index: 1, kind: input, shape index: {}]   ;;  %s1001_s2 = inlined_call_operand.vmem [shape: f32[4,1], index: 2, kind: input, shape index: {}]   ;;  %s1002_s3 = inlined_call_operand.vmem [shape: f32[4,8,1], index: 3, kind: input, shape index: {}]   ;;  %s1003_s4 = inlined_call_operand.vmem [shape: f32[8,1], index: 4, kind: input, shape index: {}]   ;;  %s1004_s5 = inlined_call_operand.vmem [shape: f32[9,256], index: 5, kind: input, shape index: {}]   ;;  %s1005_s6 = inlined_call_operand.vmem [shape: f32[2,8,256], index: 6, kind: output, shape index: {}]  }
   0x1 LB: > { %s706_s22 = sadd.s32 4294967295, %s748_s21   ;;  %p710_p0 = scmp.ge.s32.totalorder %s748_s21, 1  ;;  %s748_s21 = sphi %s795_s21, %s16_s21  }
   0x2   : > { %p212_p1 = scmp.lt.s32.totalorder %s748_s21, 3 }
   0x4   : > { %p213_p2 = pnand %p710_p0, %p212_p1 }
   0x5   : > { %v257_v0 = vld [vmem:[%s1000_s1 + $0x10] sm:$0xf] (!%p213_p2)  ;;  %v254_v1 = vld [vmem:[%s1000_s1 + $0x4] sm:$0xf] (!%p213_p2)  ;;  %p242_p3 = scmp.lt.s32.totalorder (!%p213_p2), %s706_s22, 1  ;;  %v750_v2 = vmov (!%p213_p2), 0   ;;  %v273_v26 = vlaneseq (!%p213_p2) }
   0x6   : > { %216 = sbr.rel (%p213_p2) target bundleno = 213 (0xd5), region = 44  ;;  %740 = vset.pattern.permute.xlu1 (!%p213_p2), %v750_v2  ;;  %739 = vset.pattern.permute.xlu0 (!%p213_p2), %v750_v2  ;;  %v253_v3 = vld [vmem:[%s1000_s1] sm:$0xf] (!%p213_p2)  ;;  %s751_s9 = smov (!%p213_p2), 17   ;;  %v255_v6 = vld [vmem:[%s1000_s1 + $0x8] sm:$0xf] (!%p213_p2) }
   0x7   : > { %268 = vperm.xlu0 (!%p213_p2), %739, %v257_v0   ;;  %332 = vperm.xlu1 (!%p213_p2), %740, %v254_v1   ;;  %s752_s12 = smov (!%p213_p2), 16   ;;  %v256_v7 = vld [vmem:[%s1000_s1 + $0xc] sm:$0xf] (!%p213_p2)  ;;  %s753_s15 = smov (!%p213_p2), 15   ;;  %v258_v8 = vld [vmem:[%s1000_s1 + $0x14] sm:$0xf] (!%p213_p2) }
   0x8   : > { %s754_s18 = smov (!%p213_p2), 1   ;;  %v259_v9 = vld [vmem:[%s1000_s1 + $0x18] sm:$0xf] (!%p213_p2)  ;;  %s755_s23 = smov (!%p213_p2), 127   ;;  %v260_v10 = vld [vmem:[%s1000_s1 + $0x1c] sm:$0xf] (!%p213_p2) }
   0x9   : > { %s756_s26 = smov (!%p213_p2), 113   ;;  %v261_v11 = vld [vmem:[%s1000_s1 + $0x20] sm:$0xf] (!%p213_p2)  ;;  %s758_s30 = smov (!%p213_p2), 111   ;;  %v532_v14 = vld [vmem:[%s1002_s3 + $0x8] sm:$0xff] (!%p213_p2)  ;;  %v533_v15 = vld [vmem:[%s1002_s3 + $0x10] sm:$0xff] (!%p213_p2) }
   0xa   : > { %v516_v12 = vld [vmem:[%s1001_s2] sm:$0xf] (!%p213_p2)  ;;  %v534_v16 = vld [vmem:[%s1002_s3 + $0x18] sm:$0xff] (!%p213_p2)  ;;  %v874_v29 = vshrl.u32 (!%p213_p2), %v273_v26, 7  ;;  %v876_v30 = vand.u32 (!%p213_p2), 127, %v273_v26  ;;  %v889_v36 = vld [vmem:[%s1004_s5 + $0x8] sm:$0xff] (!%p213_p2) }
   0xb   : > { %303 = vperm.xlu0 (!%p213_p2), %739, %v253_v3   ;;  %v531_v13 = vld [vmem:[%s1002_s3] sm:$0xff] (!%p213_p2)  ;;  %v759_v31 = vmov (!%p213_p2), 839922192  }
   0xc   : > { %v530_v17 = vld [vmem:[%s1003_s4] sm:$0xff] (!%p213_p2)  ;;  %v271_v32 = vunpack.c.l.s4 (!%p213_p2), %v759_v31  ;;  %v879_v33 = vsub.s32 (!%p213_p2), 0, %v874_v29  ;;  %vm288_vm0 = vcmp.lt.s32.totalorder (!%p213_p2), %v876_v30, 17  ;;  %v895_v38 = vsub.s32 (!%p213_p2), 1, %v874_v29 }
   0xd   : > { %s1007_s22 = smov (!%p242_p3, %s706_s22), 1  ;;  %v884_v35 = vld [vmem:[%s1004_s5] sm:$0xff]  ;;  %vm317_vm1 = vcmp.lt.s32.totalorder %v876_v30, 16  ;;  %v903_v45 = vsub.s32 2, %v874_v29  ;;  %vm346_vm2 = vcmp.lt.s32.totalorder %v876_v30, 15  ;;  %v911_v49 = vsub.s32 3, %v874_v29 }
   0xe   : > { %s719_s29 = sshll.u32 %s1007_s22, 3  ;;  %v272_v39 = vunpack.c.0.s8 %v271_v32  ;;  %v294_v40 = vrot.slane %v884_v35, %v879_v33  ;;  %v298_v41 = vrot.slane %v889_v36, %v879_v33  ;;  %v323_v47 = vrot.slane %v884_v35, %v895_v38 }
   0xf   : > { %s246_s8 = scalar_lea.vmem %s999_s0, %s719_s29  ;;  %s757_s29 = smov 112   ;;  %v327_v48 = vrot.slane %v889_v36, %v895_v38  ;;  %v352_v56 = vrot.slane %v884_v35, %v903_v45  ;;  %v356_v57 = vrot.slane %v889_v36, %v903_v45  ;;  %vm375_vm3 = vcmp.lt.s32.totalorder %v876_v30, 1 }
  0x10   : > { %v818_v4 = vld [vmem:[%s246_s8] sm:$0xff]  ;;  %v916_v55 = vsub.s32 %v272_v39, %v874_v29  ;;  %v924_v61 = vsub.s32 5, %v874_v29  ;;  %v381_v0 = vrot.slane %v884_v35, %v911_v49  ;;  %v385_v1 = vrot.slane %v889_v36, %v911_v49 }
  0x11   : > { %282 = vrot.lane.b32.xlu1 %v818_v4, %s751_s9  ;;  %v280_v5 = vcombine.high %v818_v4, %v818_v4  ;;  %vm404_vm4 = vcmp.lt.s32.totalorder %v876_v30, 127  ;;  %vm433_vm5 = vcmp.lt.s32.totalorder %v876_v30, 113  ;;  %vm462_vm6 = vcmp.lt.s32.totalorder %v876_v30, 112 }
  0x12   : > { %vm491_vm7 = vcmp.lt.s32.totalorder %v876_v30, 111 }
  0x13   : > { %284 = vrot.lane.b32.xlu0 %v280_v5, %s751_s9 }
  0x15   : > { %361 = vperm.xlu1 %740, %v255_v6   ;;  %v932_v6 = vsub.s32 6, %v874_v29 }
  0x17   : > { %313 = vrot.lane.b32.xlu0 %v818_v4, %s752_s12 }
  0x19   : > { %315 = vrot.lane.b32.xlu1 %v280_v5, %s752_s12 }
  0x1b   : > { %390 = vperm.xlu0 %739, %v256_v7  }
  0x1d   : > { %342 = vrot.lane.b32.xlu1 %v818_v4, %s753_s15 }
  0x1f   : > { %344 = vrot.lane.b32.xlu0 %v280_v5, %s753_s15 }
  0x21   : > { %419 = vperm.xlu1 %740, %v258_v8  }
  0x23   : > { %371 = vrot.lane.b32.xlu0 %v818_v4, %s754_s18 }
  0x25   : > { %373 = vrot.lane.b32.xlu1 %v280_v5, %s754_s18 }
  0x27   : > { %448 = vperm.xlu0 %739, %v259_v9  }
  0x29   : > { %400 = vrot.lane.b32.xlu1 %v818_v4, %s755_s23 }
  0x2b   : > { %402 = vrot.lane.b32.xlu0 %v280_v5, %s755_s23 }
  0x2d   : > { %477 = vperm.xlu1 %740, %v260_v10  }
  0x2f   : > { %429 = vrot.lane.b32.xlu0 %v818_v4, %s756_s26 }
  0x31   : > { %431 = vrot.lane.b32.xlu1 %v280_v5, %s756_s26 }
  0x33   : > { %506 = vperm.xlu0 %739, %v261_v11  }
  0x35   : > { %458 = vrot.lane.b32.xlu1 %v818_v4, %s757_s29 }
  0x37   : > { %460 = vrot.lane.b32.xlu0 %v280_v5, %s757_s29  ;;  %s720_s29 = sshll.u32 %s1007_s22, 4 }
  0x38   : > { %s251_s8 = scalar_lea.vmem %s1005_s6, %s720_s29 }
  0x39   : > { %487 = vrot.lane.b32.xlu1 %v818_v4, %s758_s30 }
  0x3b   : > { %489 = vrot.lane.b32.xlu0 %v280_v5, %s758_s30 }
  0x3d   : > { %519 = vperm.xlu1 %740, %v516_v12  }
  0x3f   : > { %537 = vperm.xlu0 %739, %v531_v13   ;;  %v410_v13 = vrot.slane %v884_v35, %v924_v61 }
  0x41   : > { %563 = vperm.xlu1 %740, %v532_v14   ;;  %v414_v14 = vrot.slane %v889_v36, %v924_v61 }
  0x43   : > { %590 = vperm.xlu0 %739, %v533_v15  }
  0x45   : > { %617 = vperm.xlu1 %740, %v534_v16  }
  0x47   : > { %644 = vperm.xlu0 %739, %v530_v17  }
  0x86   : > { %v866_v18 = vpop.permute.xlu0 %268  ;;  %v868_v19 = vpop.permute.xlu1 %332 }
  0x87   : > { %v276_v12 = vrot.slane %v866_v18, %v916_v55  ;;  %v439_v18 = vrot.slane %v884_v35, %v932_v6 }
  0x8a   : > { %v304_v20 = vpop.permute.xlu0 %303  ;;  %v283_v21 = vpop.permute.xlu1 %282 }
  0x8e   : > { %v285_v22 = vpop.permute.xlu0 %284 }
  0x8f   : > { %v289_v43 = vsel %vm288_vm0, %v283_v21, %v285_v22  ;;  %v290_v44 = vsel %vm288_vm0, %v285_v22, %v283_v21 }
  0x90   : > { %v299_v50 = vmul.f32 %v294_v40, %v290_v44  ;;  %v300_v51 = vmul.f32 %v298_v41, %v289_v43 }
  0x92   : > { %v314_v24 = vpop.permute.xlu0 %313  ;;  %v306_v2 = vmul.f32 %v304_v20, %v299_v50  ;;  %v307_v3 = vmul.f32 %v304_v20, %v300_v51 }
  0x94   : > { %v870_v23 = vpop.permute.xlu1 %361  ;;  %v310_v26 = vcombine.low %v306_v2, %v307_v3 }
  0x98   : > { %v316_v25 = vpop.permute.xlu1 %315 }
  0x99   : > { %v318_v52 = vsel %vm317_vm1, %v314_v24, %v316_v25  ;;  %v319_v53 = vsel %vm317_vm1, %v316_v25, %v314_v24  ;;  %v443_v25 = vrot.slane %v889_v36, %v932_v6 }
  0x9a   : > { %v872_v27 = vpop.permute.xlu0 %390  ;;  %v328_v62 = vmul.f32 %v323_v47, %v319_v53  ;;  %v329_v63 = vmul.f32 %v327_v48, %v318_v52 }
  0x9c   : > { %v343_v28 = vpop.permute.xlu1 %342  ;;  %v335_v15 = vmul.f32 %v868_v19, %v328_v62  ;;  %v336_v16 = vmul.f32 %v868_v19, %v329_v63 }
  0x9e   : > { %v345_v34 = vpop.permute.xlu0 %344  ;;  %v339_v43 = vcombine.low %v335_v15, %v336_v16 }
  0x9f   : > { %v347_v59 = vsel %vm346_vm2, %v343_v28, %v345_v34  ;;  %v348_v60 = vsel %vm346_vm2, %v345_v34, %v343_v28  ;;  %v950_v34 = vsub.s32 7, %v874_v29 }
  0xa0   : > { %v891_v37 = vpop.permute.xlu1 %419  ;;  %v357_v7 = vmul.f32 %v352_v56, %v348_v60  ;;  %v358_v8 = vmul.f32 %v356_v57, %v347_v59 }
  0xa1   : > { %v468_v51 = vrot.slane %v884_v35, %v950_v34  ;;  %v472_v52 = vrot.slane %v889_v36, %v950_v34 }
  0xa2   : > { %v372_v42 = vpop.permute.xlu0 %371  ;;  %v364_v28 = vmul.f32 %v870_v23, %v357_v7  ;;  %v365_v31 = vmul.f32 %v870_v23, %v358_v8 }
  0xa4   : > { %v374_v46 = vpop.permute.xlu1 %373  ;;  %v368_v56 = vcombine.low %v364_v28, %v365_v31  ;;  %v547_v28 = vsub.s32 4, %v874_v29 }
  0xa5   : > { %v376_v9 = vsel %vm375_vm3, %v372_v42, %v374_v46  ;;  %v377_v10 = vsel %vm375_vm3, %v374_v46, %v372_v42  ;;  %v278_v42 = vmul.f32 %v276_v12, %v818_v4 }
  0xa6   : > { %v913_v54 = vpop.permute.xlu0 %448  ;;  %v386_v21 = vmul.f32 %v381_v0, %v377_v10  ;;  %v387_v22 = vmul.f32 %v385_v1, %v376_v9 }
  0xa7   : > { %v312_v53 = vadd.f32 %v310_v26, %v278_v42 }
  0xa8   : > { %v401_v58 = vpop.permute.xlu1 %400  ;;  %v393_v44 = vmul.f32 %v872_v27, %v386_v21  ;;  %v394_v46 = vmul.f32 %v872_v27, %v387_v22 }
  0xaa   : > { %v403_v5 = vpop.permute.xlu0 %402  ;;  %v397_v27 = vcombine.low %v393_v44, %v394_v46 }
  0xab   : > { %v405_v17 = vsel %vm404_vm4, %v401_v58, %v403_v5  ;;  %v406_v20 = vsel %vm404_vm4, %v403_v5, %v401_v58  ;;  %v341_v58 = vadd.f32 %v339_v43, %v312_v53  ;;  %v716_v5 = vld [vmem:[%s1004_s5 + $0x18] ss:$0 sm:$0xff] }
  0xac   : > { %v478_v11 = vpop.permute.xlu1 %477  ;;  %v415_v19 = vmul.f32 %v410_v13, %v405_v17  ;;  %v416_v39 = vmul.f32 %v414_v14, %v406_v20 }
  0xad   : > { %v370_v35 = vadd.f32 %v368_v56, %v341_v58 }
  0xae   : > { %v430_v24 = vpop.permute.xlu0 %429  ;;  %v422_v4 = vmul.f32 %v891_v37, %v415_v19  ;;  %v423_v57 = vmul.f32 %v891_v37, %v416_v39  ;;  %v715_v37 = vld [vmem:[%s1004_s5 + $0x10] ss:$0 sm:$0xff] }
  0xaf   : > { %v399_v7 = vadd.f32 %v397_v27, %v370_v35 }
  0xb0   : > { %v432_v32 = vpop.permute.xlu1 %431  ;;  %v426_v1 = vcombine.low %v422_v4, %v423_v57 }
  0xb1   : > { %v434_v40 = vsel %vm433_vm5, %v430_v24, %v432_v32  ;;  %v435_v41 = vsel %vm433_vm5, %v432_v32, %v430_v24 }
  0xb2   : > { %v444_v23 = vmul.f32 %v439_v18, %v434_v40  ;;  %v445_v47 = vmul.f32 %v443_v25, %v435_v41  ;;  %v507_v48 = vpop.permute.xlu0 %506  ;;  %v428_v13 = vadd.f32 %v426_v1, %v399_v7 }
  0xb4   : > { %v459_v50 = vpop.permute.xlu1 %458  ;;  %v451_v59 = vmul.f32 %v913_v54, %v444_v23  ;;  %v452_v60 = vmul.f32 %v913_v54, %v445_v47 }
  0xb6   : > { %v461_v62 = vpop.permute.xlu0 %460  ;;  %v455_v54 = vcombine.low %v451_v59, %v452_v60 }
  0xb7   : > { %v463_v63 = vsel %vm462_vm6, %v459_v50, %v461_v62  ;;  %v464_v0 = vsel %vm462_vm6, %v461_v62, %v459_v50 }
  0xb8   : > { %v473_v36 = vmul.f32 %v468_v51, %v463_v63  ;;  %v474_v2 = vmul.f32 %v472_v52, %v464_v0  ;;  %v488_v3 = vpop.permute.xlu1 %487  ;;  %v457_v21 = vadd.f32 %v455_v54, %v428_v13 }
  0xba   : > { %v480_v8 = vmul.f32 %v478_v11, %v473_v36  ;;  %v481_v9 = vmul.f32 %v478_v11, %v474_v2  ;;  %v490_v10 = vpop.permute.xlu0 %489 }
  0xbb   : > { %v492_v12 = vsel %vm491_vm7, %v488_v3, %v490_v10  ;;  %v493_v30 = vsel %vm491_vm7, %v490_v10, %v488_v3 }
  0xbc   : > { %v484_v14 = vcombine.low %v480_v8, %v481_v9  ;;  %v502_v15 = vmul.f32 %v715_v37, %v492_v12  ;;  %v503_v16 = vmul.f32 %v716_v5, %v493_v30  ;;  %v520_v22 = vpop.permute.xlu1 %519 }
  0xbd   : > { %v527_v26 = vrot.slane %v520_v22, %v916_v55 }
  0xbe   : > { %v509_v17 = vmul.f32 %v507_v48, %v502_v15  ;;  %v510_v20 = vmul.f32 %v507_v48, %v503_v16  ;;  %v486_v24 = vadd.f32 %v484_v14, %v457_v21  ;;  %v538_v11 = vpop.permute.xlu0 %537 }
  0xc0   : > { %v513_v18 = vcombine.low %v509_v17, %v510_v20  ;;  %v564_v41 = vpop.permute.xlu1 %563 }
  0xc2   : > { %v515_v25 = vadd.f32 %v513_v18, %v486_v24  ;;  %v591_v56 = vpop.permute.xlu0 %590 }
  0xc4   : > { %v529_v31 = vadd.f32 %v527_v26, %v515_v25  ;;  %v618_v27 = vpop.permute.xlu1 %617 }
  0xc6   : > { %v544_v32 = vrot.slane %v529_v31, %v879_v33  ;;  %v548_v19 = vrot.slane %v529_v31, %v547_v28  ;;  %v569_v39 = vrot.slane %v529_v31, %v895_v38  ;;  %v573_v40 = vrot.slane %v529_v31, %v924_v61 }
  0xc7   : > { %v596_v42 = vrot.slane %v529_v31, %v903_v45  ;;  %v600_v43 = vrot.slane %v529_v31, %v932_v6  ;;  %v623_v44 = vrot.slane %v529_v31, %v911_v49  ;;  %v627_v55 = vrot.slane %v529_v31, %v950_v34 }
  0xc8   : > { %v554_v29 = vrot.slane %v544_v32, %v879_v33  ;;  %v558_v46 = vrot.slane %v548_v19, %v879_v33  ;;  %v579_v23 = vrot.slane %v569_v39, %v895_v38  ;;  %v583_v47 = vrot.slane %v573_v40, %v895_v38 }
  0xc9   : > { %v606_v48 = vrot.slane %v596_v42, %v903_v45  ;;  %v610_v61 = vrot.slane %v600_v43, %v903_v45  ;;  %v633_v50 = vrot.slane %v623_v44, %v911_v49  ;;  %v637_v6 = vrot.slane %v627_v55, %v911_v49  ;;  %v645_v49 = vpop.permute.xlu0 %644 }
  0xca   : > { %v559_v51 = vmul.f32 %v554_v29, %v538_v11  ;;  %v560_v52 = vmul.f32 %v558_v46, %v538_v11  ;;  %v584_v34 = vmul.f32 %v579_v23, %v564_v41  ;;  %v585_v53 = vmul.f32 %v583_v47, %v564_v41 }
  0xcb   : > { %v611_v57 = vmul.f32 %v606_v48, %v591_v56  ;;  %v612_v58 = vmul.f32 %v610_v61, %v591_v56  ;;  %v638_v60 = vmul.f32 %v633_v50, %v618_v27  ;;  %v639_v62 = vmul.f32 %v637_v6, %v618_v27 }
  0xcc   : > { %v586_v4 = vadd.f32 %v584_v34, %v559_v51  ;;  %v587_v33 = vadd.f32 %v585_v53, %v560_v52 }
  0xce   : > { %v613_v38 = vadd.f32 %v611_v57, %v586_v4  ;;  %v614_v59 = vadd.f32 %v612_v58, %v587_v33 }
  0xd0   : > { %v640_v45 = vadd.f32 %v638_v60, %v613_v38  ;;  %v641_v63 = vadd.f32 %v639_v62, %v614_v59 }
  0xd2   : > { %v647_v0 = vadd.f32 %v645_v49, %v640_v45  ;;  %v648_v35 = vadd.f32 %v645_v49, %v641_v63 }
  0xd4   : > { %649 = vst [vmem:[%s251_s8] sm:$0xff] %v647_v0  ;;  %650 = vst [vmem:[%s251_s8 + $0x8] sm:$0xff] %v648_v35 }
  0xd5 PF: > { %s16_s21 = sadd.s32 1, %s748_s21  }
  0xd6   : > { %p13_p4 = scmp.ge.s32.totalorder %s16_s21, 4  }
  0xd8   :  { %15 = sbr.rel (!%p13_p4) target bundleno = 1 (0x1), region = 74 }

</bundles_post_ra>
